<compile_context>
chip_gen: v6e
topology: v6e:2x2x1
jax: 0.10.0
libtpu: 0.0.40
codegen_flags: <defaults>
</compile_context>

<pallas_src>
import functools

import jax
import jax.numpy as jnp
from jax.experimental import pallas as pl
from jax.experimental.pallas import tpu as pltpu

_HIDDEN = 256
_LANE = 128


def _cdiv(a, b):
    return -(-a // b)


def _round_up(x, m):
    return _cdiv(x, m) * m


def fcq_kernel(x_ref, w1_ref, b1_ref, w2_ref, b2_ref, w3_ref, b3_ref, out_ref):
    # NOTE: when B % TB != 0 the last batch tile contains out-of-bounds
    # (garbage) rows of `state`. That is safe because every op below is
    # row-independent and the output writeback is masked; do NOT add any
    # reduction across the batch tile (e.g. max-Q over rows) without masking.
    wdt = w1_ref.dtype  # f32 on the default path, bf16 on the opt-in fast path
    x = x_ref[...].astype(wdt)
    # Layer 1: (TB, S) @ (S, 256) + (1, 256) -> ReLU   (K=16 underfills the MXU
    # but adds no passes; padding S would only add DMA bytes -> left as is.)
    h1 = jnp.dot(x, w1_ref[...], preferred_element_type=jnp.float32)
    h1 = jnp.maximum(h1 + b1_ref[...], 0.0)
    # Layer 2: (TB, 256) @ (256, 256) + (1, 256) -> ReLU   (dominant cost)
    h2 = jnp.dot(h1.astype(wdt), w2_ref[...], preferred_element_type=jnp.float32)
    h2 = jnp.maximum(h2 + b2_ref[...], 0.0)
    # Layer 3: (TB, 256) @ (256, A_pad) + (1, A_pad)   (no activation, Q-values;
    # A padded to 128 lanes -> dense, unmasked stores)
    q = jnp.dot(h2.astype(wdt), w3_ref[...], preferred_element_type=jnp.float32)
    out_ref[...] = (q + b3_ref[...]).astype(out_ref.dtype)


def prepare_params(torch_layout_params, *, weight_dtype=jnp.float32):
    """One-time conversion (outside the hot path) from PyTorch nn.Linear layout
    (out_features, in_features) / (out_features,) to the kernel layout
    (in_features, out_features) / (1, out_features), with the final layer
    zero-padded to a 128-wide (lane-dense) output.

    weight_dtype=jnp.bfloat16 enables the fast MXU path on v6e/v7x (f32
    accumulation is kept inside the kernel)."""
    w1, b1, w2, b2, w3, b3 = torch_layout_params
    w1 = jnp.asarray(w1)
    b1 = jnp.asarray(b1)
    w2 = jnp.asarray(w2)
    b2 = jnp.asarray(b2)
    w3 = jnp.asarray(w3)
    b3 = jnp.asarray(b3)

    A = w3.shape[0]  # torch layout: (out_features, in_features)
    A_pad = _round_up(max(A, 1), _LANE)

    w3t = w3.T.astype(jnp.float32)  # (256, A)
    # Padded columns are exactly zero (weights AND bias) so slicing [:, :A]
    # in the wrapper returns a bit-identical result.
    w3p = jnp.zeros((w3t.shape[0], A_pad), jnp.float32).at[:, :A].set(w3t)
    b3p = (
        jnp.zeros((1, A_pad), jnp.float32)
        .at[:, :A]
        .set(b3.reshape(1, -1).astype(jnp.float32))
    )

    wd = weight_dtype
    return (
        w1.T.astype(wd), b1.reshape(1, -1).astype(jnp.float32),
        w2.T.astype(wd), b2.reshape(1, -1).astype(jnp.float32),
        w3p.astype(wd), b3p,  # biases stay f32 (added to the f32 accumulator)
    )


def _choose_batch_tile(B, tb_max):
    """Pick a batch tile that (a) amortizes the ~0.35 us/step overhead,
    (b) is balanced (no near-empty ragged tail), and (c) yields >= 2 grid steps
    for mid/large batches so both TensorCores get work on v7x. Only 8-row
    granularity is required for f32 sublanes."""
    if B <= 256:
        return B  # single full-batch block (block dim == array dim is legal)
    n_tiles = max(2, _cdiv(B, tb_max))
    tb = _round_up(_cdiv(B, n_tiles), 8)
    return min(tb, B)


@functools.partial(jax.jit, static_argnames=("num_actions", "batch_tile"))
def fc_q_forward(state, prepared_params, *, num_actions, batch_tile=1024):
    """FC_Q forward. state: (B, state_dim) f32; prepared_params from
    prepare_params(). Returns (B, num_actions) f32 Q-values."""
    w1, b1, w2, b2, w3, b3 = prepared_params
    B, S = state.shape
    H = w1.shape[1]
    A_pad = w3.shape[1]

    TB = _choose_batch_tile(B, batch_tile)
    grid = (_cdiv(B, TB),)

    x_map = lambda i: (i, 0)      # batch-tiled activations / output
    resident = lambda i: (0, 0)   # weights & biases: same block every step -> DMA once

    q_pad = pl.pallas_call(
        fcq_kernel,
        out_shape=jax.ShapeDtypeStruct((B, A_pad), jnp.float32),
        grid_spec=pltpu.PrefetchScalarGridSpec(
            num_scalar_prefetch=0,
            grid=grid,
            in_specs=[
                pl.BlockSpec((TB, S), x_map),
                pl.BlockSpec((S, H), resident),
                pl.BlockSpec((1, H), resident),
                pl.BlockSpec((H, H), resident),
                pl.BlockSpec((1, H), resident),
                pl.BlockSpec((H, A_pad), resident),
                pl.BlockSpec((1, A_pad), resident),
            ],
            out_specs=pl.BlockSpec((TB, A_pad), x_map),
        ),
        compiler_params=pltpu.CompilerParams(
            # Batch tiles are independent -> shard across both TCs on v7x.
            dimension_semantics=("parallel",),
        ),
    )(state, w1, b1, w2, b2, w3, b3)

    # Drop the zero-padded action columns (exact: padded weights/bias are 0).
    return q_pad[:, :num_actions]


def init_fc_q_params(key, state_dim, num_actions, hidden=_HIDDEN):
    """Deterministic synthetic init matching FC_Q.__init__ (PyTorch Linear layout)."""
    ks = jax.random.split(key, 6)

    def lin(kw, kb, fan_in, fan_out):
        bound = 1.0 / jnp.sqrt(fan_in)
        w = jax.random.uniform(kw, (fan_out, fan_in), jnp.float32, -bound, bound)
        b = jax.random.uniform(kb, (fan_out,), jnp.float32, -bound, bound)
        return w, b

    w1, b1 = lin(ks[0], ks[1], state_dim, hidden)
    w2, b2 = lin(ks[2], ks[3], hidden, hidden)
    w3, b3 = lin(ks[4], ks[5], hidden, num_actions)
    return (w1, b1, w2, b2, w3, b3)


def _reference(state, torch_layout_params):
    w1, b1, w2, b2, w3, b3 = torch_layout_params
    h = jnp.maximum(state @ w1.T + b1, 0.0)
    h = jnp.maximum(h @ w2.T + b2, 0.0)
    return h @ w3.T + b3


if __name__ == "__main__":
    key = jax.random.PRNGKey(0)
    k_params, k_state_small, k_state_big = jax.random.split(key, 3)

    state_dim = 16
    num_actions = 8

    torch_params = init_fc_q_params(k_params, state_dim, num_actions)
    params_f32 = prepare_params(torch_params)  # one-time layout conversion (hoisted)
    params_bf16 = prepare_params(torch_params, weight_dtype=jnp.bfloat16)  # opt-in fast path

    # Small-batch path: single full-batch block, grid=(1,).
    batch = 8
    state = jax.random.normal(k_state_small, (batch, state_dim), jnp.float32)
    q = jax.block_until_ready(fc_q_forward(state, params_f32, num_actions=num_actions))
    ref = _reference(state, torch_params)
    assert q.shape == (batch, num_actions)
    assert jnp.allclose(q, ref, atol=1e-4, rtol=1e-5), float(jnp.max(jnp.abs(q - ref)))

    # Multi-tile path with a BALANCED ragged tail: B=300 -> TB=152, grid=(2,),
    # only 4 masked rows in the last tile (vs 212 with a fixed TB=256). Also
    # exercises the 2-step grid used for v7x two-core balance.
    batch_big = 300
    state_big = jax.random.normal(k_state_big, (batch_big, state_dim), jnp.float32)
    q_big = jax.block_until_ready(fc_q_forward(state_big, params_f32, num_actions=num_actions))
    ref_big = _reference(state_big, torch_params)
    assert q_big.shape == (batch_big, num_actions)
    assert jnp.allclose(q_big, ref_big, atol=1e-4, rtol=1e-5), float(
        jnp.max(jnp.abs(q_big - ref_big))
    )

    # Opt-in bf16-weights path (f32 accumulation): ~3x MXU time on v6e/v7x,
    # looser numerical tolerance by design.
    q_bf16 = jax.block_until_ready(
        fc_q_forward(state_big, params_bf16, num_actions=num_actions)
    )
    assert q_bf16.shape == (batch_big, num_actions)
    assert jnp.allclose(q_bf16, ref_big, atol=5e-2, rtol=5e-2), float(
        jnp.max(jnp.abs(q_bf16 - ref_big))
    )

    print("KERNEL_OK")
</pallas_src>

<mosaic_0001>
module attributes {stable_mosaic.version = 11 : i64} {
  func.func @fcq_kernel(%arg0: i32, %arg1: memref<8x16xf32, #tpu.memory_space<vmem>>, %arg2: memref<16x256xf32, #tpu.memory_space<vmem>>, %arg3: memref<1x256xf32, #tpu.memory_space<vmem>>, %arg4: memref<256x256xf32, #tpu.memory_space<vmem>>, %arg5: memref<1x256xf32, #tpu.memory_space<vmem>>, %arg6: memref<256x128xf32, #tpu.memory_space<vmem>>, %arg7: memref<1x128xf32, #tpu.memory_space<vmem>>, %arg8: memref<8x128xf32, #tpu.memory_space<vmem>>) attributes {dimension_semantics = [#tpu.dimension_semantics<parallel>], iteration_bounds = array<i64: 1>, scalar_prefetch = 0 : i64, scratch_operands = 0 : i64, tpu.core_type = #tpu.core_type<tc>, window_params = [{transform_indices = @transform_0, window_bounds = array<i64: 8, 16>}, {pipeline_mode = #tpu.pipeline_mode<synchronous>, transform_indices = @transform_1, window_bounds = array<i64: 16, 256>}, {pipeline_mode = #tpu.pipeline_mode<synchronous>, transform_indices = @transform_2, window_bounds = array<i64: 1, 256>}, {pipeline_mode = #tpu.pipeline_mode<synchronous>, transform_indices = @transform_3, window_bounds = array<i64: 256, 256>}, {pipeline_mode = #tpu.pipeline_mode<synchronous>, transform_indices = @transform_4, window_bounds = array<i64: 1, 256>}, {pipeline_mode = #tpu.pipeline_mode<synchronous>, transform_indices = @transform_5, window_bounds = array<i64: 256, 128>}, {pipeline_mode = #tpu.pipeline_mode<synchronous>, transform_indices = @transform_6, window_bounds = array<i64: 1, 128>}, {transform_indices = @transform_7, window_bounds = array<i64: 8, 128>}]} {
    %c0 = arith.constant 0 : index
    %c0_0 = arith.constant 0 : index
    %0 = vector.load %arg1[%c0, %c0_0] : memref<8x16xf32, #tpu.memory_space<vmem>>, vector<8x16xf32>
    %c0_1 = arith.constant 0 : index
    %c0_2 = arith.constant 0 : index
    %1 = vector.load %arg2[%c0_1, %c0_2] : memref<16x256xf32, #tpu.memory_space<vmem>>, vector<16x256xf32>
    %cst = arith.constant dense<0.000000e+00> : vector<8x256xf32>
    %2 = tpu.matmul %0, %1, %cst {dimension_numbers = #tpu.dot_dimension_numbers<[1], [0], [0], [1], [0, 0, 1, 1], [], []>} : vector<8x16xf32>, vector<16x256xf32>, vector<8x256xf32> -> vector<8x256xf32>
    %c0_3 = arith.constant 0 : index
    %c0_4 = arith.constant 0 : index
    %3 = vector.load %arg3[%c0_3, %c0_4] : memref<1x256xf32, #tpu.memory_space<vmem>>, vector<1x256xf32>
    %4 = vector.broadcast %3 : vector<1x256xf32> to vector<8x256xf32>
    %5 = arith.addf %2, %4 : vector<8x256xf32>
    %cst_5 = arith.constant 0.000000e+00 : f32
    %6 = vector.broadcast %cst_5 : f32 to vector<8x256xf32>
    %7 = arith.maximumf %5, %6 : vector<8x256xf32>
    %c0_6 = arith.constant 0 : index
    %c0_7 = arith.constant 0 : index
    %8 = vector.load %arg4[%c0_6, %c0_7] : memref<256x256xf32, #tpu.memory_space<vmem>>, vector<256x256xf32>
    %cst_8 = arith.constant dense<0.000000e+00> : vector<8x256xf32>
    %9 = tpu.matmul %7, %8, %cst_8 {dimension_numbers = #tpu.dot_dimension_numbers<[1], [0], [0], [1], [0, 0, 1, 1], [], []>} : vector<8x256xf32>, vector<256x256xf32>, vector<8x256xf32> -> vector<8x256xf32>
    %c0_9 = arith.constant 0 : index
    %c0_10 = arith.constant 0 : index
    %10 = vector.load %arg5[%c0_9, %c0_10] : memref<1x256xf32, #tpu.memory_space<vmem>>, vector<1x256xf32>
    %11 = vector.broadcast %10 : vector<1x256xf32> to vector<8x256xf32>
    %12 = arith.addf %9, %11 : vector<8x256xf32>
    %cst_11 = arith.constant 0.000000e+00 : f32
    %13 = vector.broadcast %cst_11 : f32 to vector<8x256xf32>
    %14 = arith.maximumf %12, %13 : vector<8x256xf32>
    %c0_12 = arith.constant 0 : index
    %c0_13 = arith.constant 0 : index
    %15 = vector.load %arg6[%c0_12, %c0_13] : memref<256x128xf32, #tpu.memory_space<vmem>>, vector<256x128xf32>
    %cst_14 = arith.constant dense<0.000000e+00> : vector<8x128xf32>
    %16 = tpu.matmul %14, %15, %cst_14 {dimension_numbers = #tpu.dot_dimension_numbers<[1], [0], [0], [1], [0, 0, 1, 1], [], []>} : vector<8x256xf32>, vector<256x128xf32>, vector<8x128xf32> -> vector<8x128xf32>
    %c0_15 = arith.constant 0 : index
    %c0_16 = arith.constant 0 : index
    %17 = vector.load %arg7[%c0_15, %c0_16] : memref<1x128xf32, #tpu.memory_space<vmem>>, vector<1x128xf32>
    %18 = vector.broadcast %17 : vector<1x128xf32> to vector<8x128xf32>
    %19 = arith.addf %16, %18 : vector<8x128xf32>
    %c0_17 = arith.constant 0 : index
    %c0_18 = arith.constant 0 : index
    %20 = vector.load %arg8[%c0_17, %c0_18] : memref<8x128xf32, #tpu.memory_space<vmem>>, vector<8x128xf32>
    tpu.vector_store %arg8[%c0_17, %c0_18], %19 {strides = array<i32>} : memref<8x128xf32, #tpu.memory_space<vmem>>, vector<8x128xf32>,
    return
  }
  func.func @transform_0(%arg0: i32) -> (i32, i32) {
    %c0_i32 = arith.constant 0 : i32
    %c0_i32_0 = arith.constant 0 : i32
    return %arg0, %c0_i32 : i32, i32
  }
  func.func @transform_1(%arg0: i32) -> (i32, i32) {
    %c0_i32 = arith.constant 0 : i32
    %c0_i32_0 = arith.constant 0 : i32
    %c0_i32_1 = arith.constant 0 : i32
    return %c0_i32, %c0_i32_0 : i32, i32
  }
  func.func @transform_2(%arg0: i32) -> (i32, i32) {
    %c0_i32 = arith.constant 0 : i32
    %c0_i32_0 = arith.constant 0 : i32
    %c0_i32_1 = arith.constant 0 : i32
    return %c0_i32, %c0_i32_0 : i32, i32
  }
  func.func @transform_3(%arg0: i32) -> (i32, i32) {
    %c0_i32 = arith.constant 0 : i32
    %c0_i32_0 = arith.constant 0 : i32
    %c0_i32_1 = arith.constant 0 : i32
    return %c0_i32, %c0_i32_0 : i32, i32
  }
  func.func @transform_4(%arg0: i32) -> (i32, i32) {
    %c0_i32 = arith.constant 0 : i32
    %c0_i32_0 = arith.constant 0 : i32
    %c0_i32_1 = arith.constant 0 : i32
    return %c0_i32, %c0_i32_0 : i32, i32
  }
  func.func @transform_5(%arg0: i32) -> (i32, i32) {
    %c0_i32 = arith.constant 0 : i32
    %c0_i32_0 = arith.constant 0 : i32
    %c0_i32_1 = arith.constant 0 : i32
    return %c0_i32, %c0_i32_0 : i32, i32
  }
  func.func @transform_6(%arg0: i32) -> (i32, i32) {
    %c0_i32 = arith.constant 0 : i32
    %c0_i32_0 = arith.constant 0 : i32
    %c0_i32_1 = arith.constant 0 : i32
    return %c0_i32, %c0_i32_0 : i32, i32
  }
  func.func @transform_7(%arg0: i32) -> (i32, i32) {
    %c0_i32 = arith.constant 0 : i32
    %c0_i32_0 = arith.constant 0 : i32
    return %arg0, %c0_i32 : i32, i32
  }
}

</mosaic_0001>

<bundles_post_ra>
// kernel: fc_q_forward.1
= control target key start
LH: loop header
LB: loop body
LE: loop exit
PB: predicated region body
PF: predicated region fallthrough
CT: control target
= control target key end

     0   :  { %12 = vsyncpa [#allocation3], 0  ;;  %s679_s0 = inlined_call_operand.hbm [shape: f32[8,16], index: 0, kind: input, shape index: {}]   ;;  %s680_s1 = inlined_call_operand.hbm [shape: f32[16,256], index: 1, kind: input, shape index: {}]   ;;  %s681_s2 = inlined_call_operand.vmem [shape: f32[1,256], index: 2, kind: input, shape index: {}]   ;;  %s682_s3 = inlined_call_operand.hbm [shape: f32[256,256], index: 3, kind: input, shape index: {}]   ;;  %s683_s4 = inlined_call_operand.vmem [shape: f32[1,256], index: 4, kind: input, shape index: {}]   ;;  %s684_s5 = inlined_call_operand.hbm [shape: f32[256,128], index: 5, kind: input, shape index: {}]   ;;  %s685_s6 = inlined_call_operand.vmem [shape: f32[1,128], index: 6, kind: input, shape index: {}]   ;;  %s686_s7 = inlined_call_operand.hbm [shape: f32[8,128], index: 7, kind: output, shape index: {}]  }
   0x1   :  { %13 = vsyncpa [#allocation6], 0 }
   0x2   :  { %14 = vsyncpa [#allocation9], 0 }
   0x3   :  { %15 = vsyncpa [#allocation4], 0  ;;  %s605_s24 = smov [#allocation5]  }
   0x4   :  { %s31_s25 = sshll.u32 %s605_s24, 4  ;;  %s32_s25 = int_to_ptr.vmem [resolvable:$true] %s31_s25 }
   0x5   :  { %s505_s26 = scalar_lea.vmem %s32_s25, 512  ;;  %p510_p1 = scmp.lt.s32.totalorder %s32_s25, %s32_s25 }
   0x6   :  { %p506_p0 = scmp.ne.s32.totalorder %s32_s25, %s505_s26  ;;  %p511_p2 = scmp.lt.s32.totalorder %s505_s26, %s505_s26 }
   0x8   :  { %p512_p3 = por %p511_p2, %p510_p1 }
   0xa   :  { %p513_p4 = pnand %p512_p3, %p506_p0 }
   0xc   :  { %516 = shalt.err (!%p513_p4)
}
   0xd   :  { %s606_s27 = smov 256   ;;  %s607_s28 = smov 16  }
   0xe   :  { %37 = dma.hbm_to_vmem [thread:$0]  %s680_s1, 512, %s32_s25, [#allocation6], %s606_s27, %s606_s27, %s607_s28  }
   0xf   :  { %s608_s8 = smov [#allocation2]   ;;  %s609_s10 = smov [#allocation7]  }
  0x10   :  { %s22_s9 = sshll.u32 %s608_s8, 4  ;;  %s45_s11 = sshll.u32 %s609_s10, 4  ;;  %s23_s9 = int_to_ptr.vmem [resolvable:$true] %s22_s9  ;;  %s46_s11 = int_to_ptr.vmem [resolvable:$true] %s45_s11 }
  0x11   :  { %s525_s12 = scalar_lea.vmem %s23_s9, 128  ;;  %p530_p6 = scmp.lt.s32.totalorder %s23_s9, %s23_s9 }
  0x12   :  { %p526_p5 = scmp.ne.s32.totalorder %s23_s9, %s525_s12  ;;  %p531_p7 = scmp.lt.s32.totalorder %s525_s12, %s525_s12 }
  0x14   :  { %p532_p8 = por %p531_p7, %p530_p6 }
  0x16   :  { %p533_p9 = pnand %p532_p8, %p526_p5 }
  0x18   :  { %536 = shalt.err (!%p533_p9)
}
  0x19   :  { %25 = dma.hbm_to_vmem [thread:$0]  %s679_s0, 128, %s23_s9, [#allocation3]  }
  0x1a   :  { %s545_s15 = scalar_lea.vmem %s46_s11, 8192  ;;  %p550_p11 = scmp.lt.s32.totalorder %s46_s11, %s46_s11 }
  0x1b   :  { %p546_p10 = scmp.ne.s32.totalorder %s46_s11, %s545_s15  ;;  %p551_p12 = scmp.lt.s32.totalorder %s545_s15, %s545_s15 }
  0x1d   :  { %p552_p13 = por %p551_p12, %p550_p11 }
  0x1f   :  { %p553_p0 = pnand %p552_p13, %p546_p10 }
  0x21   :  { %556 = shalt.err (!%p553_p0)
}
  0x22   :  { %51 = dma.hbm_to_vmem [thread:$0]  %s682_s3, 8192, %s46_s11, [#allocation6], %s606_s27, %s606_s27, %s607_s28  }
  0x23   :  { %s610_s17 = smov [#allocation8]  }
  0x24   :  { %s59_s18 = sshll.u32 %s610_s17, 4  ;;  %s60_s18 = int_to_ptr.vmem [resolvable:$true] %s59_s18 }
  0x25   :  { %s565_s19 = scalar_lea.vmem %s60_s18, 4096  ;;  %p570_p2 = scmp.lt.s32.totalorder %s60_s18, %s60_s18 }
  0x26   :  { %p566_p1 = scmp.ne.s32.totalorder %s60_s18, %s565_s19  ;;  %p571_p3 = scmp.lt.s32.totalorder %s565_s19, %s565_s19 }
  0x28   :  { %p572_p4 = por %p571_p3, %p570_p2 }
  0x2a   :  { %p573_p5 = pnand %p572_p4, %p566_p1 }
  0x2c   :  { %576 = shalt.err (!%p573_p5)
}
  0x2d   :  { %s611_s0 = smov 128   ;;  %s612_s20 = smov 8  }
  0x2e   :  { %65 = dma.hbm_to_vmem [thread:$0]  %s684_s5, 4096, %s60_s18, [#allocation9], %s611_s0, %s611_s0, %s612_s20  }
  0x2f   :  { %597 = dma.done.wait [#allocation3], 128  }
  0x30   :  { %598 = vsyncadd [#allocation3], 4294967168 }
  0x31   :  { %599 = dma.done.wait [#allocation6], 8704  }
  0x32   :  { %600 = vsyncadd [#allocation6], 4294958592 }
  0x33   :  { %601 = dma.done.wait [#allocation9], 4096  }
  0x34   :  { %602 = vsyncadd [#allocation9], 4294963200  ;;  %v613_v0 = vmov 0.0   ;;  %v84_v1 = vld [vmem:[#allocation5 + $0x18] sm:$0xff]  ;;  %v83_v2 = vld [vmem:[#allocation5 + $0x10] sm:$0xff]  ;;  %vm97_vm0 = vcmask 130048  }
  0x35   :  { %165 = vmatprep.mubr.f32.mxu0 %v613_v0  ;;  %v82_v3 = vld [vmem:[#allocation5 + $0x8] sm:$0xff]  ;;  %129 = vmatprep.subr.mxu0 %v84_v1  ;;  %v81_v4 = vld [vmem:[#allocation5] sm:$0xff]  ;;  %v80_v5 = vld [vmem:[#allocation2] sm:$0xff]  ;;  %s614_s26 = smov [#allocation10]  }
  0x36   :  { %v205_v6 = vld [vmem:[#allocation7 + $0xf8] sm:$0xff]  ;;  %130 = vmatpush1.msra.mxu0 %v83_v2  ;;  %v204_v7 = vld [vmem:[#allocation7 + $0xf0] sm:$0xff]  ;;  %v203_v8 = vld [vmem:[#allocation7 + $0xe8] sm:$0xff]  ;;  %s439_s27 = sshll.u32 %s614_s26, 4  ;;  %s440_s27 = int_to_ptr.vmem [resolvable:$true] %s439_s27 }
  0x37   :  { %250 = vmatprep.subr.mxu1 %v205_v6  ;;  %v202_v9 = vld [vmem:[#allocation7 + $0xe0] sm:$0xff]  ;;  %131 = vmatprep.subr.mxu0 %v82_v3  ;;  %v201_v10 = vld [vmem:[#allocation7 + $0xd8] sm:$0xff]  ;;  %v200_v11 = vld [vmem:[#allocation7 + $0xd0] sm:$0xff]  ;;  %p582_p7 = scmp.lt.s32.totalorder %s440_s27, %s440_s27 }
  0x38   :  { %251 = vmatpush1.msra.mxu1 %v204_v7  ;;  %132 = vmatpush1.msra.mxu0 %v81_v4  ;;  %v199_v12 = vld [vmem:[#allocation7 + $0xc8] sm:$0xff]  ;;  %v198_v13 = vld [vmem:[#allocation7 + $0xc0] sm:$0xff]  ;;  %v197_v14 = vld [vmem:[#allocation7 + $0xb8] sm:$0xff] }
  0x39   :  { %252 = vmatprep.subr.mxu1 %v203_v8  ;;  %450 = vmatmul.mubr.msk.f32.vlgmr.msra.gmra.mxu0 %vm97_vm0, %v80_v5  ;;  %v196_v15 = vld [vmem:[#allocation7 + $0xb0] sm:$0xff]  ;;  %v195_v16 = vld [vmem:[#allocation7 + $0xa8] sm:$0xff]  ;;  %v194_v17 = vld [vmem:[#allocation7 + $0xa0] sm:$0xff] }
  0x3a   :  { %253 = vmatpush1.msra.mxu1 %v202_v9  ;;  %v193_v18 = vld [vmem:[#allocation7 + $0x98] sm:$0xff]  ;;  %v192_v19 = vld [vmem:[#allocation7 + $0x90] sm:$0xff]  ;;  %v191_v20 = vld [vmem:[#allocation7 + $0x88] sm:$0xff] }
  0x3b   :  { %254 = vmatprep.subr.mxu1 %v201_v10  ;;  %v190_v21 = vld [vmem:[#allocation7 + $0x80] sm:$0xff]  ;;  %v189_v22 = vld [vmem:[#allocation7 + $0x78] sm:$0xff]  ;;  %v188_v23 = vld [vmem:[#allocation7 + $0x70] sm:$0xff] }
  0x3c   :  { %255 = vmatpush1.msra.mxu1 %v200_v11  ;;  %v187_v24 = vld [vmem:[#allocation7 + $0x68] sm:$0xff]  ;;  %v186_v25 = vld [vmem:[#allocation7 + $0x60] sm:$0xff]  ;;  %v185_v26 = vld [vmem:[#allocation7 + $0x58] sm:$0xff] }
  0x3d   :  { %256 = vmatprep.subr.mxu1 %v199_v12  ;;  %v184_v27 = vld [vmem:[#allocation7 + $0x50] sm:$0xff]  ;;  %v183_v28 = vld [vmem:[#allocation7 + $0x48] sm:$0xff]  ;;  %v182_v29 = vld [vmem:[#allocation7 + $0x40] sm:$0xff] }
  0x3e   :  { %257 = vmatpush1.msra.mxu1 %v198_v13  ;;  %v181_v30 = vld [vmem:[#allocation7 + $0x38] sm:$0xff]  ;;  %v180_v31 = vld [vmem:[#allocation7 + $0x30] sm:$0xff]  ;;  %v179_v32 = vld [vmem:[#allocation7 + $0x28] sm:$0xff] }
  0x3f   :  { %258 = vmatprep.subr.mxu1 %v197_v14  ;;  %v178_v33 = vld [vmem:[#allocation7 + $0x20] sm:$0xff]  ;;  %v177_v34 = vld [vmem:[#allocation7 + $0x18] sm:$0xff]  ;;  %v176_v35 = vld [vmem:[#allocation7 + $0x10] sm:$0xff] }
  0x40   :  { %259 = vmatpush1.msra.mxu1 %v196_v15  ;;  %v175_v36 = vld [vmem:[#allocation7 + $0x8] sm:$0xff]  ;;  %v174_v37 = vld [vmem:[#allocation7] sm:$0xff]  ;;  %v237_v38 = vld [vmem:[#allocation7 + $0x1f8] sm:$0xff] }
  0x41   :  { %260 = vmatprep.subr.mxu1 %v195_v16  ;;  %v236_v39 = vld [vmem:[#allocation7 + $0x1f0] sm:$0xff]  ;;  %v235_v40 = vld [vmem:[#allocation7 + $0x1e8] sm:$0xff]  ;;  %v234_v41 = vld [vmem:[#allocation7 + $0x1e0] sm:$0xff] }
  0x42   :  { %261 = vmatpush1.msra.mxu1 %v194_v17  ;;  %v233_v42 = vld [vmem:[#allocation7 + $0x1d8] sm:$0xff]  ;;  %v232_v43 = vld [vmem:[#allocation7 + $0x1d0] sm:$0xff]  ;;  %v231_v44 = vld [vmem:[#allocation7 + $0x1c8] sm:$0xff] }
  0x43   :  { %262 = vmatprep.subr.mxu1 %v193_v18  ;;  %v230_v45 = vld [vmem:[#allocation7 + $0x1c0] sm:$0xff]  ;;  %v229_v46 = vld [vmem:[#allocation7 + $0x1b8] sm:$0xff]  ;;  %v228_v47 = vld [vmem:[#allocation7 + $0x1b0] sm:$0xff] }
  0x44   :  { %263 = vmatpush1.msra.mxu1 %v192_v19  ;;  %v227_v48 = vld [vmem:[#allocation7 + $0x1a8] sm:$0xff]  ;;  %v226_v49 = vld [vmem:[#allocation7 + $0x1a0] sm:$0xff]  ;;  %v225_v50 = vld [vmem:[#allocation7 + $0x198] sm:$0xff] }
  0x45   :  { %264 = vmatprep.subr.mxu1 %v191_v20  ;;  %v224_v51 = vld [vmem:[#allocation7 + $0x190] sm:$0xff]  ;;  %v223_v52 = vld [vmem:[#allocation7 + $0x188] sm:$0xff]  ;;  %v222_v53 = vld [vmem:[#allocation7 + $0x180] sm:$0xff] }
  0x46   :  { %265 = vmatpush1.msra.mxu1 %v190_v21  ;;  %v221_v54 = vld [vmem:[#allocation7 + $0x178] sm:$0xff]  ;;  %v220_v55 = vld [vmem:[#allocation7 + $0x170] sm:$0xff]  ;;  %v219_v56 = vld [vmem:[#allocation7 + $0x168] sm:$0xff] }
  0x47   :  { %266 = vmatprep.subr.mxu1 %v189_v22  ;;  %v218_v57 = vld [vmem:[#allocation7 + $0x160] sm:$0xff]  ;;  %v217_v58 = vld [vmem:[#allocation7 + $0x158] sm:$0xff]  ;;  %v216_v59 = vld [vmem:[#allocation7 + $0x150] sm:$0xff] }
  0x48   :  { %267 = vmatpush1.msra.mxu1 %v188_v23  ;;  %v215_v60 = vld [vmem:[#allocation7 + $0x148] sm:$0xff]  ;;  %v214_v61 = vld [vmem:[#allocation7 + $0x140] sm:$0xff]  ;;  %v213_v62 = vld [vmem:[#allocation7 + $0x138] sm:$0xff] }
  0x49   :  { %268 = vmatprep.subr.mxu1 %v187_v24  ;;  %v212_v63 = vld [vmem:[#allocation7 + $0x130] sm:$0xff]  ;;  %v211_v0 = vld [vmem:[#allocation7 + $0x128] sm:$0xff]  ;;  %v210_v1 = vld [vmem:[#allocation7 + $0x120] sm:$0xff] }
  0x4a   :  { %269 = vmatpush1.msra.mxu1 %v186_v25  ;;  %v209_v2 = vld [vmem:[#allocation7 + $0x118] sm:$0xff]  ;;  %v208_v3 = vld [vmem:[#allocation7 + $0x110] sm:$0xff]  ;;  %v207_v4 = vld [vmem:[#allocation7 + $0x108] sm:$0xff] }
  0x4b   :  { %270 = vmatprep.subr.mxu1 %v185_v26  ;;  %v206_v5 = vld [vmem:[#allocation7 + $0x100] sm:$0xff]  ;;  %v354_v6 = vld [vmem:[#allocation8 + $0xf8] sm:$0xff]  ;;  %v353_v8 = vld [vmem:[#allocation8 + $0xf0] sm:$0xff] }
  0x4c   :  { %271 = vmatpush1.msra.mxu1 %v184_v27  ;;  %v338_v7 = vld [vmem:[#allocation8 + $0x78] sm:$0xff]  ;;  %452 = vmatprep.subr.mxu0 %v354_v6  ;;  %v337_v9 = vld [vmem:[#allocation8 + $0x70] sm:$0xff]  ;;  %v352_v10 = vld [vmem:[#allocation8 + $0xe8] sm:$0xff] }
  0x4d   :  { %272 = vmatprep.subr.mxu1 %v183_v28  ;;  %453 = vmatpush3.msra.mxu0 %v338_v7  ;;  %v336_v11 = vld [vmem:[#allocation8 + $0x68] sm:$0xff]  ;;  %v351_v12 = vld [vmem:[#allocation8 + $0xe0] sm:$0xff]  ;;  %v350_v14 = vld [vmem:[#allocation8 + $0xd8] sm:$0xff] }
  0x4e   :  { %273 = vmatpush1.msra.mxu1 %v182_v29  ;;  %454 = vmatprep.subr.mxu0 %v353_v8  ;;  %v335_v13 = vld [vmem:[#allocation8 + $0x60] sm:$0xff]  ;;  %v334_v15 = vld [vmem:[#allocation8 + $0x58] sm:$0xff]  ;;  %v349_v16 = vld [vmem:[#allocation8 + $0xd0] sm:$0xff] }
  0x4f   :  { %274 = vmatprep.subr.mxu1 %v181_v30  ;;  %455 = vmatpush3.msra.mxu0 %v337_v9  ;;  %v333_v17 = vld [vmem:[#allocation8 + $0x50] sm:$0xff]  ;;  %v348_v18 = vld [vmem:[#allocation8 + $0xc8] sm:$0xff]  ;;  %v347_v20 = vld [vmem:[#allocation8 + $0xc0] sm:$0xff]  ;;  %v87_v30 = vlaneseq }
  0x50   :  { %275 = vmatpush1.msra.mxu1 %v180_v31  ;;  %456 = vmatprep.subr.mxu0 %v352_v10  ;;  %v332_v19 = vld [vmem:[#allocation8 + $0x48] sm:$0xff]  ;;  %v331_v21 = vld [vmem:[#allocation8 + $0x40] sm:$0xff]  ;;  %v346_v22 = vld [vmem:[#allocation8 + $0xb8] sm:$0xff] }
  0x51   :  { %276 = vmatprep.subr.mxu1 %v179_v32  ;;  %457 = vmatpush3.msra.mxu0 %v336_v11  ;;  %v330_v23 = vld [vmem:[#allocation8 + $0x38] sm:$0xff]  ;;  %v345_v24 = vld [vmem:[#allocation8 + $0xb0] sm:$0xff]  ;;  %v344_v26 = vld [vmem:[#allocation8 + $0xa8] sm:$0xff]  ;;  %v88_v31 = vshrl.u32 %v87_v30, 7 }
  0x52   :  { %277 = vmatpush1.msra.mxu1 %v178_v33  ;;  %458 = vmatprep.subr.mxu0 %v351_v12  ;;  %v329_v25 = vld [vmem:[#allocation8 + $0x30] sm:$0xff]  ;;  %v328_v27 = vld [vmem:[#allocation8 + $0x28] sm:$0xff]  ;;  %v343_v28 = vld [vmem:[#allocation8 + $0xa0] sm:$0xff] }
  0x53   :  { %278 = vmatprep.subr.mxu1 %v177_v34  ;;  %459 = vmatpush3.msra.mxu0 %v335_v13  ;;  %v327_v29 = vld [vmem:[#allocation8 + $0x20] sm:$0xff]  ;;  %v89_v32 = vsub.s32 0, %v88_v31  ;;  %v85_v33 = vld [vmem:[%s681_s2] sm:$0x3]  ;;  %v93_v34 = vsub.s32 1, %v88_v31 }
  0x54   :  { %279 = vmatpush1.msra.mxu1 %v176_v35  ;;  %460 = vmatprep.subr.mxu0 %v350_v14 }
  0x55   :  { %280 = vmatprep.subr.mxu1 %v175_v36  ;;  %461 = vmatpush3.msra.mxu0 %v334_v15  ;;  %v90_v35 = vrot.slane %v85_v33, %v89_v32  ;;  %v94_v36 = vrot.slane %v85_v33, %v93_v34 }
  0x56   :  { %281 = vmatpush1.msra.mxu1 %v174_v37  ;;  %462 = vmatprep.subr.mxu0 %v349_v16 }
  0x57   :  { %282 = vmatprep.subr.mxu1 %v237_v38  ;;  %463 = vmatpush3.msra.mxu0 %v333_v17 }
  0x58   :  { %283 = vmatpush2.msra.mxu1 %v236_v39  ;;  %464 = vmatprep.subr.mxu0 %v348_v18 }
  0x59   :  { %284 = vmatprep.subr.mxu1 %v235_v40  ;;  %465 = vmatpush3.msra.mxu0 %v332_v19 }
  0x5a   :  { %285 = vmatpush2.msra.mxu1 %v234_v41  ;;  %466 = vmatprep.subr.mxu0 %v347_v20 }
  0x5b   :  { %286 = vmatprep.subr.mxu1 %v233_v42  ;;  %467 = vmatpush3.msra.mxu0 %v331_v21 }
  0x5c   :  { %287 = vmatpush2.msra.mxu1 %v232_v43  ;;  %468 = vmatprep.subr.mxu0 %v346_v22  ;;  %v342_v43 = vld [vmem:[#allocation8 + $0x98] sm:$0xff] }
  0x5d   :  { %288 = vmatprep.subr.mxu1 %v231_v44  ;;  %469 = vmatpush3.msra.mxu0 %v330_v23  ;;  %v326_v44 = vld [vmem:[#allocation8 + $0x18] sm:$0xff] }
  0x5e   :  { %289 = vmatpush2.msra.mxu1 %v230_v45  ;;  %470 = vmatprep.subr.mxu0 %v345_v24  ;;  %v341_v45 = vld [vmem:[#allocation8 + $0x90] sm:$0xff] }
  0x5f   :  { %290 = vmatprep.subr.mxu1 %v229_v46  ;;  %471 = vmatpush3.msra.mxu0 %v329_v25  ;;  %v325_v46 = vld [vmem:[#allocation8 + $0x10] sm:$0xff] }
  0x60   :  { %291 = vmatpush2.msra.mxu1 %v228_v47  ;;  %472 = vmatprep.subr.mxu0 %v344_v26  ;;  %v340_v47 = vld [vmem:[#allocation8 + $0x88] sm:$0xff] }
  0x61   :  { %292 = vmatprep.subr.mxu1 %v227_v48  ;;  %473 = vmatpush3.msra.mxu0 %v328_v27  ;;  %v324_v48 = vld [vmem:[#allocation8 + $0x8] sm:$0xff] }
  0x62   :  { %293 = vmatpush2.msra.mxu1 %v226_v49  ;;  %474 = vmatprep.subr.mxu0 %v343_v28  ;;  %v339_v49 = vld [vmem:[#allocation8 + $0x80] sm:$0xff] }
  0x63   :  { %294 = vmatprep.subr.mxu1 %v225_v50  ;;  %475 = vmatpush3.msra.mxu0 %v327_v29  ;;  %v323_v50 = vld [vmem:[#allocation8] sm:$0xff] }
  0x64   :  { %295 = vmatpush2.msra.mxu1 %v224_v51  ;;  %476 = vmatprep.subr.mxu0 %v342_v43  ;;  %v238_v51 = vld [vmem:[%s683_s4] sm:$0x3]  ;;  %s577_s4 = scalar_lea.vmem %s440_s27, 128 }
  0x65   :  { %296 = vmatprep.subr.mxu1 %v223_v52  ;;  %477 = vmatpush3.msra.mxu0 %v326_v44  ;;  %v243_v52 = vrot.slane %v238_v51, %v89_v32  ;;  %p578_p6 = scmp.ne.s32.totalorder %s440_s27, %s577_s4  ;;  %p583_p8 = scmp.lt.s32.totalorder %s577_s4, %s577_s4 }
  0x66   :  { %297 = vmatpush2.msra.mxu1 %v222_v53  ;;  %478 = vmatprep.subr.mxu0 %v341_v45  ;;  %v247_v53 = vrot.slane %v238_v51, %v93_v34 }
  0x67   :  { %298 = vmatprep.subr.mxu1 %v221_v54  ;;  %479 = vmatpush3.msra.mxu0 %v325_v46  ;;  %p584_p9 = por %p583_p8, %p582_p7 }
  0x68   :  { %299 = vmatpush2.msra.mxu1 %v220_v55  ;;  %480 = vmatprep.subr.mxu0 %v340_v47 }
  0x69   :  { %300 = vmatprep.subr.mxu1 %v219_v56  ;;  %481 = vmatpush3.msra.mxu0 %v324_v48  ;;  %p585_p10 = pnand %p584_p9, %p578_p6 }
  0x6a   :  { %301 = vmatpush2.msra.mxu1 %v218_v57  ;;  %482 = vmatprep.subr.mxu0 %v339_v49 }
  0x6b   :  { %302 = vmatprep.subr.mxu1 %v217_v58  ;;  %483 = vmatpush3.msra.mxu0 %v323_v50 }
  0x6c   :  { %303 = vmatpush2.msra.mxu1 %v216_v59 }
  0x6d   :  { %304 = vmatprep.subr.mxu1 %v215_v60 }
  0x6e   :  { %305 = vmatpush2.msra.mxu1 %v214_v61  ;;  %v451_v61 = vld [vmem:[%s685_s6] ss:$0 sm:$0xff] }
  0x6f   :  { %306 = vmatprep.subr.mxu1 %v213_v62 }
  0x70   :  { %307 = vmatpush2.msra.mxu1 %v212_v63 }
  0x71   :  { %308 = vmatprep.subr.mxu1 %v211_v0 }
  0x72   :  { %309 = vmatpush2.msra.mxu1 %v210_v1 }
  0x73   :  { %310 = vmatprep.subr.mxu1 %v209_v2 }
  0x74   :  { %311 = vmatpush2.msra.mxu1 %v208_v3 }
  0x75   :  { %312 = vmatprep.subr.mxu1 %v207_v4 }
  0x76   :  { %313 = vmatpush2.msra.mxu1 %v206_v5 }
  0xf9   :  { %v167_v37 = vpop.f32.mrf.mxu0 }
  0xfa   :  { %v168_v38 = vadd.f32 %v167_v37, %v90_v35 }
  0xfb   :  { %v169_v39 = vpop.f32.mrf.mxu0 }
  0xfc   :  { %v170_v40 = vadd.f32 %v169_v39, %v94_v36  ;;  %v172_v42 = vmax.f32 %v168_v38, 0.0 }
  0xfe   :  { %v173_v41 = vmax.f32 %v170_v40, 0.0 }
 0x100   :  { %314 = vmatprep.mubr.f32.mxu1 %v173_v41 }
 0x101   :  { %315 = vmatmul.mubr.f32.vlgmr.msra.gmra.mxu1 %v172_v42 }
 0x1c1   :  { %v316_v54 = vpop.f32.mrf.mxu1 }
 0x1c2   :  { %v317_v55 = vadd.f32 %v316_v54, %v243_v52 }
 0x1c3   :  { %v318_v56 = vpop.f32.mrf.mxu1 }
 0x1c4   :  { %v319_v57 = vadd.f32 %v318_v56, %v247_v53  ;;  %v321_v59 = vmax.f32 %v317_v55, 0.0 }
 0x1c6   :  { %v322_v58 = vmax.f32 %v319_v57, 0.0 }
 0x1c8   :  { %426 = vmatprep.mubr.f32.mxu0 %v322_v58 }
 0x1c9   :  { %427 = vmatmul.mubr.f32.vlgmr.msra.gmra.mxu0 %v321_v59 }
 0x289   :  { %v484_v60 = vpop.f32.mrf.mxu0 }
 0x28b   :  { %v485_v62 = vpop.f32.mrf.mxu0 }
 0x28c   :  { %v486_v63 = vadd.f32 %v485_v62, %v484_v60 }
 0x28e   :  { %v429_v0 = vadd.f32 %v486_v63, %v451_v61 }
 0x290   :  { %432 = vst [vmem:[#allocation10] sm:$0xff] %v429_v0 }
 0x291   :  { %588 = shalt.err (!%p585_p10)
}
 0x292   :  { %442 = dma.vmem_to_hbm [thread:$0]  %s440_s27, 128, %s686_s7, [#allocation4]  }
 0x293   :  { %603 = dma.done.wait [#allocation4], 128  }
 0x294   :  { %604 = vsyncadd [#allocation4], 4294967168 }
 0x295   :  { %446 = vsyncpa [#allocation3], 1 }
 0x296   :  { %447 = vsyncpa [#allocation6], 1 }
 0x297   :  { %448 = vsyncpa [#allocation9], 1 }
 0x298   :  { %449 = vsyncpa [#allocation4], 1 }

</bundles_post_ra>
